<compile_context>
chip_gen: v7x
topology: tpu7x:2x2x1
jax: 0.10.0
libtpu: 0.0.40
codegen_flags: <defaults>
</compile_context>

<pallas_src>
import functools
import math

import jax
import jax.numpy as jnp
from jax import lax
from jax.experimental import pallas as pl
from jax.experimental.pallas import tpu as pltpu

_NEG_LOG_1E4 = -math.log(1e-4)  # = 9.210340371976184


def _sce_kernel(pred_ref, y_ref, out_ref, *, alpha, beta, n_total, tiles_per_half):
    p = pl.program_id(0)            # parallel slice (maps to a TensorCore on v7x)
    i = pl.program_id(1)            # serial batch-tile index within the slice
    n_inner = pl.num_programs(1)

    @pl.when(i == 0)
    def _init():
        out_ref[...] = jnp.zeros_like(out_ref)   # (8,128) = one vreg, per-slice accumulator

    # Cast in-kernel (bf16 ingested directly; v5e has no bf16 VALU anyway).
    pred = pred_ref[...].astype(jnp.float32)      # (TILE_N, C)
    y = y_ref[...]                                # (TILE_N, 1) int32
    tn, c = pred.shape

    # --- log-softmax / cross entropy ------------------------------------------
    m = jnp.max(pred, axis=1, keepdims=True)      # (TILE_N, 1)
    exp_s = jnp.exp(pred - m)                     # (TILE_N, C)
    sum_exp = jnp.sum(exp_s, axis=1, keepdims=True)
    lse = jnp.log(sum_exp) + m                    # (TILE_N, 1)

    col = lax.broadcasted_iota(jnp.int32, (tn, c), 1)
    pred_y = jnp.sum(jnp.where(col == y, pred, 0.0), axis=1, keepdims=True)

    # --- reverse cross entropy (algebraic form, clip simplified) ---------------
    rcp = pl.reciprocal(sum_exp, approx=False)    # (TILE_N, 1)
    # sum_c clamp(softmax, 1e-7, 1.0):  upper clip never fires for softmax; the
    # reciprocal is factored out of the per-element multiply.
    total_p = rcp * jnp.sum(jnp.maximum(exp_s, 1e-7 * sum_exp),
                            axis=1, keepdims=True)
    p_y = jnp.maximum(jnp.exp(pred_y - m) * rcp, 1e-7)

    ce_rows = lse - pred_y                        # (TILE_N, 1)
    fused = alpha * ce_rows + (beta * _NEG_LOG_1E4) * (total_p - p_y)

    # Mask rows beyond the real batch (partial last tile / duplicated clamped tile).
    # This is a true select, so NaN/garbage from padded rows cannot leak.
    row = lax.broadcasted_iota(jnp.int32, (tn, 1), 0)
    t_idx = p * tiles_per_half + i                # unclamped global tile index
    valid = (t_idx * tn + row) < n_total
    fused = jnp.where(valid, fused, 0.0)

    out_ref[...] += jnp.sum(fused)                # scalar broadcast into the vreg

    @pl.when(i == n_inner - 1)
    def _finalize():
        out_ref[...] *= (1.0 / n_total)


def _pick_tile_n(n, c, itemsize, budget_bytes=24 * 1024 * 1024):
    """Largest batch tile (multiple of 8, <=4096) whose f32 working set fits the budget.

    Working set per row:
      ~5 live (1, C) f32 temporaries (cast pred, exp_s, clipped exp, onehot select, iota)
      + 2x double-buffered input row (C * itemsize)
      + 2x lane-padded label row (128 lanes * 4 B).
    """
    per_row = 5 * c * 4 + 2 * c * itemsize + 2 * 128 * 4
    t = budget_bytes // max(1, per_row)
    t = int(min(4096, max(8, t)))
    t -= t % 8
    return t


def symmetric_cross_entropy(pred, y, alpha=0.1, beta=1.0, tile_n=None):
    """pred: (N, C) float logits (f32 or bf16), y: (N,) int labels. Returns scalar f32."""
    n, c = pred.shape
    itemsize = jnp.dtype(pred.dtype).itemsize
    if tile_n is None:
        tile_n = _pick_tile_n(n, c, itemsize)
    if tile_n >= n:
        tile_n = n
    else:
        tile_n = max(8, (int(tile_n) // 8) * 8)
        if tile_n >= n:
            tile_n = n

    num_tiles = -(-n // tile_n)
    tiles_per_half = -(-num_tiles // 2)   # tiles per parallel slice
    last_blk = num_tiles - 1

    y2 = y.reshape(n, 1).astype(jnp.int32)

    def in_map(p_, i_):
        # Clamp so a dummy (odd-count) iteration re-reads the last block; its rows
        # are masked out inside the kernel.
        return (jnp.minimum(p_ * tiles_per_half + i_, last_blk), 0)

    kernel = functools.partial(
        _sce_kernel, alpha=float(alpha), beta=float(beta),
        n_total=n, tiles_per_half=tiles_per_half)

    out = pl.pallas_call(
        kernel,
        # One (8,128) block per parallel slice; only element [0,0] of each is used.
        out_shape=jax.ShapeDtypeStruct((16, 128), jnp.float32),
        grid=(2, tiles_per_half),
        in_specs=[
            pl.BlockSpec((tile_n, c), in_map),
            pl.BlockSpec((tile_n, 1), in_map),
        ],
        out_specs=pl.BlockSpec((8, 128), lambda p_, i_: (p_, 0)),
        compiler_params=pltpu.CompilerParams(
            dimension_semantics=("parallel", "arbitrary"),   # 2 TCs on v7x; serial reduce axis
            vmem_limit_bytes=32 * 1024 * 1024,
        ),
        cost_estimate=pl.CostEstimate(
            flops=7 * n * c,
            transcendentals=n * c,
            bytes_accessed=n * c * itemsize + n * 4 + 16 * 128 * 4,
        ),
    )(pred, y2)
    return out[0, 0] + out[8, 0]


def _reference(pred, y, alpha=0.1, beta=1.0):
    # Pure-JAX reference mirroring the PyTorch forward.
    n, c = pred.shape
    logp = jax.nn.log_softmax(pred, axis=1)
    ce = -jnp.mean(jnp.take_along_axis(logp, y[:, None], axis=1))
    p = jnp.clip(jax.nn.softmax(pred, axis=1), 1e-7, 1.0)
    oh = jnp.clip(jax.nn.one_hot(y, c, dtype=jnp.float32), 1e-4, 1.0)
    rce = jnp.mean(-jnp.sum(p * jnp.log(oh), axis=1))
    return alpha * ce + beta * rce


if __name__ == "__main__":
    key = jax.random.PRNGKey(0)
    k1, k2 = jax.random.split(key)

    N, C = 20, 128  # N not a multiple of the tile -> exercises masked partial tiles
    pred = jax.random.normal(k1, (N, C), dtype=jnp.float32)
    y = jax.random.randint(k2, (N,), 0, C, dtype=jnp.int32)

    ref = _reference(pred, y, alpha=0.1, beta=1.0)

    # Tiled path: 3 tiles -> odd count exercises the clamped duplicate block on slice p=1.
    loss_tiled = jax.block_until_ready(symmetric_cross_entropy(pred, y, tile_n=8))
    assert jnp.allclose(loss_tiled, ref, rtol=1e-5, atol=1e-5), (loss_tiled, ref)

    # Auto-tile path: single full block on slice p=0, fully-masked duplicate on p=1.
    loss_auto = jax.block_until_ready(symmetric_cross_entropy(pred, y))
    assert jnp.allclose(loss_auto, ref, rtol=1e-5, atol=1e-5), (loss_auto, ref)

    # bf16 logits ingested directly; cast to f32 happens inside the kernel.
    pred_bf16 = pred.astype(jnp.bfloat16)
    ref_bf16 = _reference(pred_bf16.astype(jnp.float32), y, alpha=0.1, beta=1.0)
    loss_bf16 = jax.block_until_ready(
        symmetric_cross_entropy(pred_bf16, y, tile_n=16))
    assert jnp.allclose(loss_bf16, ref_bf16, rtol=1e-4, atol=1e-4), (loss_bf16, ref_bf16)

    print("KERNEL_OK")
</pallas_src>

<mosaic_0001>
module attributes {stable_mosaic.version = 11 : i64} {
  func.func @_sce_kernel(%arg0: i32, %arg1: i32, %arg2: memref<8x128xf32, #tpu.memory_space<vmem>>, %arg3: memref<8x1xi32, #tpu.memory_space<vmem>>, %arg4: memref<8x128xf32, #tpu.memory_space<vmem>>) attributes {dimension_semantics = [#tpu.dimension_semantics<parallel>, #tpu.dimension_semantics<arbitrary>], iteration_bounds = array<i64: 2, 2>, scalar_prefetch = 0 : i64, scratch_operands = 0 : i64, tpu.core_type = #tpu.core_type<tc>, window_params = [{transform_indices = @transform_0, window_bounds = array<i64: 8, 128>}, {transform_indices = @transform_1, window_bounds = array<i64: 8, 1>}, {transform_indices = @transform_2, window_bounds = array<i64: 8, 128>}]} {
    %c0_i32 = arith.constant 0 : i32
    %0 = arith.cmpi eq, %arg1, %c0_i32 : i32
    %1 = arith.extui %0 : i1 to i32
    %c0_i32_0 = arith.constant 0 : i32
    %2 = arith.cmpi ne, %1, %c0_i32_0 : i32
    scf.if %2 {
      %cst_19 = arith.constant 0.000000e+00 : f32
      %62 = vector.broadcast %cst_19 : f32 to vector<8x128xf32>
      %c0_20 = arith.constant 0 : index
      %c0_21 = arith.constant 0 : index
      %63 = vector.load %arg4[%c0_20, %c0_21] : memref<8x128xf32, #tpu.memory_space<vmem>>, vector<8x128xf32>
      tpu.vector_store %arg4[%c0_20, %c0_21], %62 {strides = array<i32>} : memref<8x128xf32, #tpu.memory_space<vmem>>, vector<8x128xf32>,
    } else {
    }
    %c0 = arith.constant 0 : index
    %c0_1 = arith.constant 0 : index
    %3 = vector.load %arg2[%c0, %c0_1] : memref<8x128xf32, #tpu.memory_space<vmem>>, vector<8x128xf32>
    %c0_2 = arith.constant 0 : index
    %c0_3 = arith.constant 0 : index
    %4 = vector.load %arg3[%c0_2, %c0_3] : memref<8x1xi32, #tpu.memory_space<vmem>>, vector<8x1xi32>
    %cst = arith.constant dense<0xFF800000> : vector<8xf32>
    %5 = vector.multi_reduction <maximumf>, %3, %cst [1] : vector<8x128xf32> to vector<8xf32>
    %6 = vector.shape_cast %5 : vector<8xf32> to vector<8x1xf32>
    %7 = vector.broadcast %6 : vector<8x1xf32> to vector<8x128xf32>
    %8 = arith.subf %3, %7 : vector<8x128xf32>
    %9 = math.exp %8 : vector<8x128xf32>
    %cst_4 = arith.constant dense<0.000000e+00> : vector<8xf32>
    %10 = vector.multi_reduction <add>, %9, %cst_4 [1] : vector<8x128xf32> to vector<8xf32>
    %11 = vector.shape_cast %10 : vector<8xf32> to vector<8x1xf32>
    %12 = math.log %11 : vector<8x1xf32>
    %13 = arith.addf %12, %6 : vector<8x1xf32>
    %14 = tpu.iota {dimensions = array<i32: 1>} : vector<8x128xi32>
    %15 = vector.broadcast %4 : vector<8x1xi32> to vector<8x128xi32>
    %16 = arith.cmpi eq, %14, %15 : vector<8x128xi32>
    %cst_5 = arith.constant 0.000000e+00 : f32
    %17 = vector.broadcast %cst_5 : f32 to vector<8x128xf32>
    %18 = arith.select %16, %3, %17 : vector<8x128xi1>, vector<8x128xf32>
    %cst_6 = arith.constant dense<0.000000e+00> : vector<8xf32>
    %19 = vector.multi_reduction <add>, %18, %cst_6 [1] : vector<8x128xf32> to vector<8xf32>
    %20 = vector.shape_cast %19 : vector<8xf32> to vector<8x1xf32>
    %21 = tpu.reciprocal %11 : vector<8x1xf32> -> vector<8x1xf32>
    %cst_7 = arith.constant 1.000000e-07 : f32
    %22 = vector.broadcast %cst_7 : f32 to vector<8x1xf32>
    %23 = arith.mulf %22, %11 : vector<8x1xf32>
    %24 = vector.broadcast %23 : vector<8x1xf32> to vector<8x128xf32>
    %25 = arith.maximumf %9, %24 : vector<8x128xf32>
    %cst_8 = arith.constant dense<0.000000e+00> : vector<8xf32>
    %26 = vector.multi_reduction <add>, %25, %cst_8 [1] : vector<8x128xf32> to vector<8xf32>
    %27 = vector.shape_cast %26 : vector<8xf32> to vector<8x1xf32>
    %28 = arith.mulf %21, %27 : vector<8x1xf32>
    %29 = arith.subf %20, %6 : vector<8x1xf32>
    %30 = math.exp %29 : vector<8x1xf32>
    %31 = arith.mulf %30, %21 : vector<8x1xf32>
    %cst_9 = arith.constant 1.000000e-07 : f32
    %32 = vector.broadcast %cst_9 : f32 to vector<8x1xf32>
    %33 = arith.maximumf %31, %32 : vector<8x1xf32>
    %34 = arith.subf %13, %20 : vector<8x1xf32>
    %cst_10 = arith.constant 1.000000e-01 : f32
    %35 = vector.broadcast %cst_10 : f32 to vector<8x1xf32>
    %36 = arith.mulf %35, %34 : vector<8x1xf32>
    %37 = arith.subf %28, %33 : vector<8x1xf32>
    %cst_11 = arith.constant 9.21034049 : f32
    %38 = vector.broadcast %cst_11 : f32 to vector<8x1xf32>
    %39 = arith.mulf %38, %37 : vector<8x1xf32>
    %40 = arith.addf %36, %39 : vector<8x1xf32>
    %41 = tpu.iota {dimensions = array<i32: 0>} : vector<8x1xi32>
    %c2_i32 = arith.constant 2 : i32
    %42 = arith.muli %arg0, %c2_i32 : i32
    %43 = arith.addi %42, %arg1 : i32
    %c8_i32 = arith.constant 8 : i32
    %44 = arith.muli %43, %c8_i32 : i32
    %45 = vector.broadcast %44 : i32 to vector<8x1xi32>
    %46 = arith.addi %45, %41 : vector<8x1xi32>
    %c20_i32 = arith.constant 20 : i32
    %47 = vector.broadcast %c20_i32 : i32 to vector<8x1xi32>
    %48 = arith.cmpi slt, %46, %47 : vector<8x1xi32>
    %cst_12 = arith.constant 0.000000e+00 : f32
    %49 = vector.broadcast %cst_12 : f32 to vector<8x1xf32>
    %50 = arith.select %48, %40, %49 : vector<8x1xi1>, vector<8x1xf32>
    %c0_13 = arith.constant 0 : index
    %c0_14 = arith.constant 0 : index
    %51 = vector.load %arg4[%c0_13, %c0_14] : memref<8x128xf32, #tpu.memory_space<vmem>>, vector<8x128xf32>
    %52 = vector.shape_cast %50 : vector<8x1xf32> to vector<1x8x1xf32>
    %cst_15 = arith.constant dense<0.000000e+00> : vector<1xf32>
    %53 = vector.multi_reduction <add>, %52, %cst_15 [1, 2] : vector<1x8x1xf32> to vector<1xf32>
    %54 = vector.shape_cast %53 : vector<1xf32> to vector<1x1x1xf32>
    %55 = vector.extract %54[0, 0, 0] : f32 from vector<1x1x1xf32>
    %56 = vector.broadcast %55 : f32 to vector<8x128xf32>
    %57 = arith.addf %51, %56 : vector<8x128xf32>
    %c0_16 = arith.constant 0 : index
    %c0_17 = arith.constant 0 : index
    %58 = vector.load %arg4[%c0_16, %c0_17] : memref<8x128xf32, #tpu.memory_space<vmem>>, vector<8x128xf32>
    tpu.vector_store %arg4[%c0_16, %c0_17], %57 {strides = array<i32>} : memref<8x128xf32, #tpu.memory_space<vmem>>, vector<8x128xf32>,
    %c1_i32 = arith.constant 1 : i32
    %59 = arith.cmpi eq, %arg1, %c1_i32 : i32
    %60 = arith.extui %59 : i1 to i32
    %c0_i32_18 = arith.constant 0 : i32
    %61 = arith.cmpi ne, %60, %c0_i32_18 : i32
    scf.if %61 {
      %c0_19 = arith.constant 0 : index
      %c0_20 = arith.constant 0 : index
      %62 = vector.load %arg4[%c0_19, %c0_20] : memref<8x128xf32, #tpu.memory_space<vmem>>, vector<8x128xf32>
      %cst_21 = arith.constant 5.000000e-02 : f32
      %63 = vector.broadcast %cst_21 : f32 to vector<8x128xf32>
      %64 = arith.mulf %62, %63 : vector<8x128xf32>
      %c0_22 = arith.constant 0 : index
      %c0_23 = arith.constant 0 : index
      %65 = vector.load %arg4[%c0_22, %c0_23] : memref<8x128xf32, #tpu.memory_space<vmem>>, vector<8x128xf32>
      tpu.vector_store %arg4[%c0_22, %c0_23], %64 {strides = array<i32>} : memref<8x128xf32, #tpu.memory_space<vmem>>, vector<8x128xf32>,
    } else {
    }
    return
  }
  func.func @transform_0(%arg0: i32, %arg1: i32) -> (i32, i32) {
    %c2_i32 = arith.constant 2 : i32
    %0 = arith.muli %arg0, %c2_i32 : i32
    %1 = arith.addi %0, %arg1 : i32
    %c2_i32_0 = arith.constant 2 : i32
    %2 = arith.minsi %1, %c2_i32_0 : i32
    %c0_i32 = arith.constant 0 : i32
    %c0_i32_1 = arith.constant 0 : i32
    return %2, %c0_i32 : i32, i32
  }
  func.func @transform_1(%arg0: i32, %arg1: i32) -> (i32, i32) {
    %c2_i32 = arith.constant 2 : i32
    %0 = arith.muli %arg0, %c2_i32 : i32
    %1 = arith.addi %0, %arg1 : i32
    %c2_i32_0 = arith.constant 2 : i32
    %2 = arith.minsi %1, %c2_i32_0 : i32
    %c0_i32 = arith.constant 0 : i32
    %c0_i32_1 = arith.constant 0 : i32
    return %2, %c0_i32 : i32, i32
  }
  func.func @transform_2(%arg0: i32, %arg1: i32) -> (i32, i32) {
    %c0_i32 = arith.constant 0 : i32
    %c0_i32_0 = arith.constant 0 : i32
    return %arg0, %c0_i32 : i32, i32
  }
}

</mosaic_0001>

<bundles_post_ra>
// kernel: tpu_custom_call.1
= control target key start
LH: loop header
LB: loop body
LE: loop exit
PB: predicated region body
PF: predicated region fallthrough
CT: control target
= control target key end

     0   :  { %7 = vsyncpa [#allocation3], 0  ;;  %s767_s0 = inlined_call_operand.vmem [shape: f32[20,128], index: 0, kind: input, shape index: {}]   ;;  %s768_s1 = inlined_call_operand.vmem [shape: s32[20,1], index: 1, kind: input, shape index: {}]   ;;  %s769_s2 = inlined_call_operand.hbm [shape: f32[16,128], index: 2, kind: output, shape index: {}]  }
   0x1   :  { %9 = vsyncpa [#allocation3 + $0x1], 0  ;;  %s619_s9 = smov 0   ;;  %s621_s10 = smov 0  }
   0x2   :  { %s623_s11 = smov 0   ;;  %s625_s12 = smov 0  }
   0x3   :  { %s627_s13 = smov 0   ;;  %s629_s14 = smov 0  }
   0x4   :  { %s631_s15 = smov 0   ;;  %s633_s16 = smov 0  }
   0x5 LB: > { %s393_s17 = sadd.s32 4294967295, %s599_s16   ;;  %s394_s18 = sadd.s32 4294967294, %s599_s16   ;;  %s599_s16 = sphi %s633_s16, %s15_s16   ;;  %s595_s15 = sphi %s631_s15, %s778_s15   ;;  %s591_s14 = sphi %s629_s14, %s777_s14   ;;  %s587_s13 = sphi %s627_s13, %s776_s13   ;;  %s583_s12 = sphi %s625_s12, %s775_s12   ;;  %s579_s11 = sphi %s623_s11, %s774_s11   ;;  %s575_s10 = sphi %s621_s10, %s773_s10   ;;  %s571_s9 = sphi %s619_s9, %s772_s9  }
   0x6   : > { %s24_s19 = sadd.s32 1, %s591_s14  ;;  %s27_s20 = sadd.s32 1, %s595_s15 }
   0x7   : > { %p25_p0 = scmp.ge.s32.totalorder %s24_s19, 2  ;;  %p112_p1 = scmp.ne.s32.totalorder %s579_s11, %s575_s10 }
   0x8   : > { %p113_p2 = scmp.eq.s32.totalorder %s393_s17, 3  ;;  %p118_p4 = scmp.ne.s32.totalorder %s575_s10, %s571_s9 }
   0x9   : > { %s780_s19 = smov (%p25_p0, %s24_s19), 0  ;;  %s782_s20 = smov (!%p25_p0, %s27_s20), %s595_s15 }
   0xa   : > { %p668_p3 = por %p113_p2, %p112_p1  ;;  %p29_p5 = scmp.ge.s32.totalorder %s782_s20, 2 }
   0xb   : > { %p119_p6 = scmp.eq.s32.totalorder %s394_s18, 3  ;;  %p401_p7 = scmp.ge.s32.totalorder %s599_s16, 1 }
   0xc   : > { %p167_p8 = scmp.lt.s32.totalorder %s599_s16, 5  ;;  %s784_s20 = smov (%p29_p5, %s782_s20), 0 }
   0xd   : > { %p678_p9 = por %p119_p6, %p118_p4  ;;  %s99_s23 = ssub.s32 %s595_s15, %s784_s20 }
   0xe   : > { %p168_p10 = pnand %p401_p7, %p167_p8  ;;  %s102_s24 = sadd.s32 1, %s579_s11 }
   0xf   : > { %p100_p11 = scmp.eq.s32.totalorder %s99_s23, 0  ;;  %s197_s26 = sand.u32 (!%p168_p10), 1, %s575_s10  }
  0x10   : > { %171 = sbr.rel (%p168_p10) target bundleno = 729 (0x2d9), region = 28  ;;  %s403_s27 = sshll.u32 (!%p168_p10), %s587_s13, 1 }
  0x11   : > { %s686_s25 = scalar_select %p100_p11, %s579_s11, %s102_s24  }
  0x12   : > { %s402_s28 = sshll.u32 (!%p168_p10), %s197_s26, 3  ;;  %s693_s29 = sadd.s32 (!%p168_p10), %s583_s12, %s403_s27 }
  0x13   : > { %p202_p12 = scmp.lt.s32.totalorder (!%p168_p10), %s693_s29, 2  ;;  %s703_s18 = scalar_lea.vmem (!%p168_p10), [#allocation2], %s402_s28 }
  0x14   : > { %p413_p13 = scmp.ne.s32.totalorder (!%p168_p10), %s583_s12, 0 }
  0x17   : > { %s203_s30 = scalar_select %p202_p12, %s693_s29, 2 }
  0x18   : > { %227 = sbr.rel (%p413_p13) target bundleno = 31 (0x1f), region = 32  ;;  %v601_v0 = vmov (!%p413_p13), 0.0  }
  0x19   : > { %s786_s30 = smov (!%p202_p12, %s203_s30), 2  ;;  %228 = vst [vmem:[%s703_s18] sm:$0xff] (!%p413_p13), %v601_v0 }
  0x1a   : > { %s407_s3 = sshll.u32 %s786_s30, 3 }
  0x1b   : > { %s207_s6 = scalar_lea.vmem %s767_s0, %s407_s3  ;;  %s219_s17 = scalar_lea.vmem %s768_s1, %s407_s3 }
  0x1f PF: > { %v229_v1 = vld [vmem:[%s207_s6] sm:$0xff]  ;;  %v602_v2 = vmov 0   ;;  %v241_v7 = vlaneseq  ;;  %s415_s23 = sshll.u32 %s693_s29, 3  ;;  %vm276_vm2 = vcmask 7168   ;;  %p416_p0 = scmp.ne.s32.totalorder %s583_s12, 1 }
  0x20   : > { %231 = vmax.xlane.f32.xlu0 %v229_v1  ;;  %v230_v3 = vld [vmem:[%s219_s17] sm:$0xff]  ;;  %v271_v25 = vstv %s415_s23 }
  0x21   : > { %496 = vset.pattern.permute.xlu0 %v602_v2  ;;  %v242_v8 = vand.u32 127, %v241_v7  ;;  %v267_v24 = vshrl.u32 %v241_v7, 7  ;;  %v275_v44 = vld [vmem:[%s703_s18] sm:$0xff] }
  0x23   : > { %v272_v30 = vadd.s32 %v271_v25, %v267_v24 }
  0x25   : > { %vm273_vm1 = vcmp.lt.s32.totalorder %v272_v30, 20 }
  0x36   : > { %244 = vperm.xlu0 %496, %v230_v3  }
  0xad   : > { %v232_v4 = vpop.xlane.xlu0 %231 }
  0xae   : > { %v233_v5 = vsub.f32 %v229_v1, %v232_v4 }
  0xb0   : > { %v234_v6 = vmul.f32 1.442695, %v233_v5 }
  0xb2   : > { %497 = vpow2.f32 %v234_v6 }
  0xb5   : > { %v245_v9 = vpop.permute.xlu0 %244 }
  0xb6   : > { %vm246_vm0 = vcmp.eq.s32.totalorder %v242_v8, %v245_v9 }
  0xb7   : > { %v247_v11 = vsel %vm246_vm0, %v229_v1, 0.0 }
  0xbc   : > { %v498_v10 = vpop.eup %497 }
  0xbd   : > { %236 = vadd.xlane.f32.xlu1 %v498_v10 }
  0xc1   : > { %248 = vadd.xlane.f32.xlu1 %v247_v11 }
 0x14a   : > { %v237_v12 = vpop.xlane.xlu1 %236 }
 0x14b   : > { %v251_v13 = vmul.f32 1e-07, %v237_v12  ;;  %499 = vlog2.f32 %v237_v12 }
 0x14d   : > { %v252_v14 = vmax.f32 %v498_v10, %v251_v13 }
 0x14e   : > { %v249_v15 = vpop.xlane.xlu1 %248 }
 0x14f   : > { %253 = vadd.xlane.f32.xlu1 %v252_v14  ;;  %v256_v16 = vsub.f32 %v249_v15, %v232_v4 }
 0x151   : > { %v257_v17 = vmul.f32 1.442695, %v256_v16 }
 0x153   : > { %501 = vpow2.f32 %v257_v17 }
 0x154   : > { %503 = vrcp.f32 %v237_v12 }
 0x155   : > { %v500_v18 = vpop.eup %499 }
 0x156   : > { %v239_v19 = vmul.f32 0.6931472, %v500_v18 }
 0x158   : > { %v240_v22 = vadd.f32 %v239_v19, %v232_v4 }
 0x15a   : > { %v261_v27 = vsub.f32 %v240_v22, %v249_v15 }
 0x15c   : > { %v262_v32 = vmul.f32 0.1, %v261_v27 }
 0x15d   : > { %v502_v20 = vpop.eup %501 }
 0x15e   : > { %v504_v21 = vpop.eup %503 }
 0x15f   : > { %v259_v23 = vmul.f32 %v504_v21, %v502_v20 }
 0x161   : > { %v260_v28 = vmax.f32 %v259_v23, 1e-07 }
 0x1dc   : > { %v254_v26 = vpop.xlane.xlu1 %253 }
 0x1dd   : > { %v255_v29 = vmul.f32 %v504_v21, %v254_v26 }
 0x1df   : > { %v263_v31 = vsub.f32 %v255_v29, %v260_v28 }
 0x1e1   : > { %v264_v33 = vmul.f32 9.2103405, %v263_v31 }
 0x1e3   : > { %v265_v34 = vadd.f32 %v264_v33, %v262_v32 }
 0x1e5   : > { %v274_v35 = vsel %vm273_vm1, %v265_v34, 0.0 }
 0x1e6   : > { %v277_v36 = vsel %vm276_vm2, %v274_v35, 0.0 }
 0x1e7   : > { %278 = vadd.xlane.f32.xlu1 %v277_v36 }
 0x274   : > { %v279_v37 = vpop.xlane.xlu1 %278 }
 0x275   : > { %v280_v38 = vrot.slane %v279_v37, 4 }
 0x277   : > { %v281_v39 = vadd.f32 %v280_v38, %v279_v37 }
 0x279   : > { %v282_v40 = vrot.slane %v281_v39, 2 }
 0x27b   : > { %v283_v41 = vadd.f32 %v282_v40, %v281_v39 }
 0x27d   : > { %v284_v42 = vrot.slane %v283_v41, 1 }
 0x27f   : > { %v285_v43 = vadd.f32 %v284_v42, %v283_v41 }
 0x281   : > { %421 = vpush %v285_v43 }
 0x2b0   : > { %293 = sbr.rel (%p416_p0) target bundleno = 705 (0x2c1), region = 36 }
 0x2b2   : > { %s422_s24 = spop %421 }
 0x2b3   : > { %v287_v45 = vstv %s422_s24 }
 0x2b4   : > { %v288_v46 = vadd.f32 %v287_v45, %v275_v44 }
 0x2b6   : > { %289 = vst [vmem:[%s703_s18] sm:$0xff] %v288_v46 }
 0x2bd   : > { %v294_v47 = vld [vmem:[%s703_s18] sm:$0xff] }
 0x2be   : > { %v295_v48 = vmul.f32 0.05, %v294_v47 }
 0x2c0   : > { %296 = vst [vmem:[%s703_s18] sm:$0xff] %v295_v48 }
 0x2c1 PF: > { %s418_s27 = sshll.u32 %s587_s13, 7  ;;  %s311_s3 = sshll.u32 %s703_s18, 4  ;;  %s312_s3 = int_to_ptr.vmem [resolvable:$true] %s311_s3 }
 0x2c2   : > { %s717_s30 = scalar_lea.hbm %s769_s2, %s418_s27  ;;  %s298_s12 = scalar_lea.sflag [#allocation3], %s197_s26 }
 0x2c3   : > { %s505_s4 = scalar_lea.vmem %s312_s3, 128  ;;  %s603_s5 = smov [#allocation2]  }
 0x2c4   : > { %p506_p1 = scmp.ne.s32.totalorder %s312_s3, %s505_s4  ;;  %s509_s6 = sshll.u32 %s603_s5, 4  ;;  %s510_s6 = int_to_ptr.vmem [resolvable:$false] %s509_s6 }
 0x2c5   : > { %s511_s7 = scalar_lea.vmem %s510_s6, 256  ;;  %p512_p5 = scmp.lt.s32.totalorder %s312_s3, %s510_s6 }
 0x2c6   : > { %p507_p2 = pnand %p506_p1, %p668_p3  ;;  %p513_p6 = scmp.lt.s32.totalorder %s511_s7, %s505_s4 }
 0x2c8   : > { %p508_p4 = pneg %p507_p2  ;;  %p514_p7 = por %p513_p6, %p512_p5 }
 0x2ca   : > { %p515_p8 = pnand %p514_p7, %p508_p4 }
 0x2cc   : > { %518 = shalt.err (!%p515_p8)
}
 0x2cd   : > { %s519_s13 = scalar_lea.hbm %s717_s30, 128  ;;  %s523_s17 = scalar_lea.hbm %s769_s2, 256 }
 0x2ce   : > { %p520_p10 = scmp.ne.s32.totalorder %s717_s30, %s519_s13  ;;  %p524_p13 = scmp.lt.u32.totalorder %s717_s30, %s769_s2 }
 0x2cf   : > { %p525_p0 = scmp.lt.u32.totalorder %s523_s17, %s519_s13  ;;  %p527_p2 = scmp.lt.u32.totalorder %s519_s13, %s717_s30 }
 0x2d0   : > { %p521_p11 = pnand %p520_p10, %p668_p3 }
 0x2d1   : > { %p526_p1 = por %p525_p0, %p524_p13 }
 0x2d2   : > { %p522_p12 = pneg %p521_p11 }
 0x2d3   : > { %p528_p4 = por %p527_p2, %p526_p1 }
 0x2d5   : > { %p529_p5 = pnand %p528_p4, %p522_p12 }
 0x2d7   : > { %532 = shalt.err (!%p529_p5)
}
 0x2d8   : > { %423 = dma.vmem_to_hbm [thread:$0]  (%p668_p3), %s312_s3, 128, %s717_s30, %s298_s12  }
 0x2d9 PF: > { %p429_p6 = scmp.ge.s32.totalorder %s599_s16, 2  ;;  %s323_s24 = sand.u32 1, %s571_s9  }
 0x2da   : > { %s324_s27 = scalar_lea.sflag [#allocation3], %s323_s24 }
 0x2db   : > { %p426_p7 = pnand %p429_p6, %p678_p9 }
 0x2dd   : > { %566 = dma.done.wait (!%p426_p7), %s324_s27, 128  }
 0x2de   : > { %568 = vsyncadd (!%p426_p7), %s324_s27, 4294967168  ;;  %s15_s16 = sadd.s32 1, %s599_s16   ;;  %s772_s9 = smov %s575_s10 }
 0x2df   : > { %p12_p8 = scmp.ge.s32.totalorder %s15_s16, 6   ;;  %s773_s10 = smov %s579_s11 }
 0x2e0   : > { %s774_s11 = smov %s686_s25  ;;  %s775_s12 = smov %s591_s14 }
 0x2e1   : > { %s776_s13 = smov %s595_s15  ;;  %s777_s14 = smov %s780_s19 }
 0x2e2   : > { %s778_s15 = smov %s784_s20  ;;  %14 = sbr.rel (!%p12_p8) target bundleno = 5 (0x5), region = 74 }
 0x2e9   :  { %329 = vsyncpa [#allocation3], 1 }
 0x2ea   :  { %331 = vsyncpa [#allocation3 + $0x1], 1 }

</bundles_post_ra>
